<compile_context>
chip_gen: v6e
topology: v6e:2x2x1
jax: 0.10.0
libtpu: 0.0.40
codegen_flags: <defaults>
</compile_context>

<pallas_src>
import jax
import jax.numpy as jnp
from jax.experimental import pallas as pl
from jax.experimental.pallas import tpu as pltpu

_LANES = 128
_MXU_MIN_C = 16              # crossover: below this, unrolled VPU FMAs win
_BLOCK_BYTES_CAP = 2 << 20   # ~2 MiB activation blocks (amortizes step overhead)
_VMEM_LIMIT_CAP = 32 << 20   # scoped-VMEM request that is safe on v5e/v6e/v7x


def _ceil_div(a, b):
    return -(-a // b)


def _round_up(a, b):
    return _ceil_div(a, b) * b


# ----------------------------- tiny-C (VPU) path -----------------------------

def _make_vpu_kernel(C):
    """Blocks are (1, C, S, 128): dense vregs; weights are SMEM scalars."""
    def kernel(x_ref, wa_ref, w1_ref, b1_ref, w2_ref, b2_ref, w3_ref, b3_ref,
               o_ref):
        xs = [x_ref[0, ci].astype(jnp.float32) for ci in range(C)]  # C x (S,128)

        # a = sigmoid(sum_c wa[c] * x[c])   -- scalar-splat FMAs + EUP sigmoid.
        logit = wa_ref[0] * xs[0]
        for ci in range(1, C):
            logit = logit + wa_ref[ci] * xs[ci]
        a = jax.nn.sigmoid(logit)

        axs = [a * xc for xc in xs]
        rxs = [xc - axc for xc, axc in zip(xs, axs)]   # (1 - a) * x == x - a*x

        def stage(w_ref, b_ref, ts):
            outs = []
            for co in range(C):
                acc = w_ref[co, 0] * ts[0]
                for ci in range(1, C):
                    acc = acc + w_ref[co, ci] * ts[ci]
                outs.append(jnp.maximum(acc + b_ref[co], 0.0))
            return outs

        y1 = stage(w1_ref, b1_ref, axs)
        y2 = stage(w2_ref, b2_ref, rxs)
        y3 = stage(w3_ref, b3_ref, [u + v for u, v in zip(y1, y2)])
        for co in range(C):
            o_ref[0, co] = y3[co].astype(o_ref.dtype)
    return kernel


def _srm_vpu(x3, wa, w1s, b1, w2s, b2, w3s, b3):
    N, C, HW = x3.shape
    s_total = _ceil_div(HW, _LANES)
    s_cap = max(8, _BLOCK_BYTES_CAP // (C * _LANES * 4))
    if s_total <= s_cap:
        s_blk, nt = s_total, 1
    else:
        s_blk = (s_cap // 8) * 8                 # sublane-aligned block
        nt = _ceil_div(s_total, s_blk)
    hwp = nt * s_blk * _LANES
    if hwp != HW:
        x3 = jnp.pad(x3, ((0, 0), (0, 0), (0, hwp - HW)))
    x4 = x3.reshape(N, C, hwp // _LANES, _LANES)

    smem = pl.BlockSpec(memory_space=pltpu.MemorySpace.SMEM)
    blk = pl.BlockSpec((1, C, s_blk, _LANES), lambda n, t: (n, 0, t, 0))

    blk_bytes = C * s_blk * _LANES * 4
    vmem_need = 4 * blk_bytes + (1 << 20)        # 2x double-buffered in + out
    out = pl.pallas_call(
        _make_vpu_kernel(C),
        out_shape=jax.ShapeDtypeStruct((N, C, hwp // _LANES, _LANES),
                                       jnp.float32),
        grid=(N, nt),
        in_specs=[blk, smem, smem, smem, smem, smem, smem, smem],
        out_specs=blk,
        compiler_params=pltpu.CompilerParams(
            dimension_semantics=("parallel", "parallel"),
            vmem_limit_bytes=int(min(max(vmem_need, 16 << 20),
                                     _VMEM_LIMIT_CAP))),
    )(x4, wa, w1s, b1, w2s, b2, w3s, b3)
    return out.reshape(N, C, hwp)[:, :, :HW]


# ------------------------------ large-C (MXU) path ----------------------------

def _mxu_kernel(x_ref, wa_ref, w1_ref, b1_ref, w2_ref, b2_ref, w3_ref, b3_ref,
                o_ref):
    x = x_ref[0].astype(jnp.float32)                           # (C, T)
    # Attention logit on the VPU/XLU: an M=1 matmul would waste MXU rows.
    logit = jnp.sum(wa_ref[...] * x, axis=0, keepdims=True)    # (1, T)
    a = jax.nn.sigmoid(logit)
    ax = a * x
    rax = x - ax                                               # (1 - a) * x

    def stage(w_ref, b_ref, t):
        y = jnp.dot(w_ref[...], t, preferred_element_type=jnp.float32)
        return jnp.maximum(y + b_ref[...], 0.0)

    y1 = stage(w1_ref, b1_ref, ax)
    y2 = stage(w2_ref, b2_ref, rax)
    o_ref[0] = stage(w3_ref, b3_ref, y1 + y2).astype(o_ref.dtype)


def _srm_mxu(x3, wa, w1s, b1, w2s, b2, w3s, b3):
    N, C, HW = x3.shape
    thw_cap = max(_LANES, (_BLOCK_BYTES_CAP // (C * 4)) // _LANES * _LANES)
    hw128 = _round_up(HW, _LANES)
    if hw128 <= thw_cap:
        thw, nt = hw128, 1
    else:
        thw, nt = thw_cap, _ceil_div(hw128, thw_cap)
    hwp = nt * thw
    if hwp != HW:
        x3 = jnp.pad(x3, ((0, 0), (0, 0), (0, hwp - HW)))

    def full(shape):
        return pl.BlockSpec(shape, lambda n, t: (0, 0))

    blk = pl.BlockSpec((1, C, thw), lambda n, t: (n, 0, t))

    weight_bytes = (3 * C * C + 4 * C) * 4
    vmem_need = 4 * (C * thw * 4) + 2 * weight_bytes + (1 << 20)
    out = pl.pallas_call(
        _mxu_kernel,
        out_shape=jax.ShapeDtypeStruct((N, C, hwp), jnp.float32),
        grid=(N, nt),
        in_specs=[blk, full((C, 1)),
                  full((C, C)), full((C, 1)),
                  full((C, C)), full((C, 1)),
                  full((C, C)), full((C, 1))],
        out_specs=blk,
        compiler_params=pltpu.CompilerParams(
            dimension_semantics=("parallel", "parallel"),
            vmem_limit_bytes=int(min(max(vmem_need, 16 << 20),
                                     _VMEM_LIMIT_CAP))),
    )(x3, wa.reshape(C, 1), w1s, b1.reshape(C, 1), w2s, b2.reshape(C, 1),
      w3s, b3.reshape(C, 1))
    return out[:, :, :HW]


# --------------------------------- wrappers -----------------------------------

@jax.jit
def _srm_folded(x, wa, w1s, b1, w2s, b2, w3s, b3):
    """x: (N,C,H,W) f32; wa: (C,); wKs: (C,C) BN-scale-folded; bK: (C,)."""
    N, C, H, W = x.shape
    x3 = x.reshape(N, C, H * W)     # contiguous reshape, no transpose
    if C >= _MXU_MIN_C:
        out = _srm_mxu(x3, wa, w1s, b1, w2s, b2, w3s, b3)
    else:
        out = _srm_vpu(x3, wa, w1s, b1, w2s, b2, w3s, b3)
    return out.reshape(N, C, H, W)


def srm_pallas(x, wa, w1, bn1, w2, bn2, w3, bn3, eps=1e-5):
    """SRM forward. bnK = (gamma, beta, running_mean, running_var), each (C,)."""
    def fold(w, bn):
        gamma, beta, mean, var = bn
        scale = gamma / jnp.sqrt(var + eps)
        return w * scale[:, None], beta - mean * scale

    w1s, b1 = fold(w1, bn1)
    w2s, b2 = fold(w2, bn2)
    w3s, b3 = fold(w3, bn3)
    return _srm_folded(x, wa, w1s, b1, w2s, b2, w3s, b3)


def _reference(x, wa, w1, bn1, w2, bn2, w3, bn3, eps=1e-5):
    """Pure-JAX reference mirroring the PyTorch forward (inference-mode BN)."""
    hp = jax.lax.Precision.HIGHEST

    def cbr(t, w, bn):
        gamma, beta, mean, var = bn
        scale = gamma / jnp.sqrt(var + eps)
        bias = beta - mean * scale
        y = jnp.einsum("oc,nchw->nohw", w, t, precision=hp)
        y = y * scale[None, :, None, None] + bias[None, :, None, None]
        return jnp.maximum(y, 0.0)

    logit = jnp.einsum("c,nchw->nhw", wa, x, precision=hp)[:, None, :, :]
    a = jax.nn.sigmoid(logit)
    x1 = cbr(a * x, w1, bn1)
    x2 = cbr((1.0 - a) * x, w2, bn2)
    return cbr(x1 + x2, w3, bn3)


if __name__ == "__main__":
    key = jax.random.PRNGKey(0)
    N, C, H, W = 2, 4, 16, 16
    keys = jax.random.split(key, 17)

    x = jax.random.normal(keys[0], (N, C, H, W), jnp.float32)
    wa = jax.random.normal(keys[1], (C,), jnp.float32) * 0.5   # conv: C -> 1

    def make_stage(k0):
        w = jax.random.normal(keys[k0], (C, C), jnp.float32) * 0.4
        gamma = 1.0 + 0.1 * jax.random.normal(keys[k0 + 1], (C,), jnp.float32)
        beta = 0.05 * jax.random.normal(keys[k0 + 2], (C,), jnp.float32)
        mean = 0.1 * jax.random.normal(keys[k0 + 3], (C,), jnp.float32)
        var = jnp.abs(jax.random.normal(keys[k0 + 4], (C,), jnp.float32)) * 0.2 + 0.8
        return w, (gamma, beta, mean, var)

    w1, bn1 = make_stage(2)
    w2, bn2 = make_stage(7)
    w3, bn3 = make_stage(12)

    out = srm_pallas(x, wa, w1, bn1, w2, bn2, w3, bn3)
    out = jax.block_until_ready(out)

    ref = _reference(x, wa, w1, bn1, w2, bn2, w3, bn3)
    assert out.shape == ref.shape == (N, C, H, W)
    assert jnp.allclose(out, ref, rtol=1e-4, atol=1e-4), (
        f"max abs diff = {jnp.max(jnp.abs(out - ref))}")

    print("KERNEL_OK")
</pallas_src>

<mosaic_0001>
module attributes {stable_mosaic.version = 11 : i64} {
  func.func @kernel(%arg0: i32, %arg1: i32, %arg2: memref<1x4x2x128xf32, #tpu.memory_space<vmem>>, %arg3: memref<4xf32, #tpu.memory_space<smem>>, %arg4: memref<4x4xf32, #tpu.memory_space<smem>>, %arg5: memref<4xf32, #tpu.memory_space<smem>>, %arg6: memref<4x4xf32, #tpu.memory_space<smem>>, %arg7: memref<4xf32, #tpu.memory_space<smem>>, %arg8: memref<4x4xf32, #tpu.memory_space<smem>>, %arg9: memref<4xf32, #tpu.memory_space<smem>>, %arg10: memref<1x4x2x128xf32, #tpu.memory_space<vmem>>) attributes {dimension_semantics = [#tpu.dimension_semantics<parallel>, #tpu.dimension_semantics<parallel>], iteration_bounds = array<i64: 2, 1>, scalar_prefetch = 0 : i64, scratch_operands = 0 : i64, tpu.core_type = #tpu.core_type<tc>, window_params = [{transform_indices = @transform_0, window_bounds = array<i64: 1, 4, 2, 128>}, {transform_indices = @transform_1, window_bounds = array<i64: 4>}, {transform_indices = @transform_2, window_bounds = array<i64: 4, 4>}, {transform_indices = @transform_3, window_bounds = array<i64: 4>}, {transform_indices = @transform_4, window_bounds = array<i64: 4, 4>}, {transform_indices = @transform_5, window_bounds = array<i64: 4>}, {transform_indices = @transform_6, window_bounds = array<i64: 4, 4>}, {transform_indices = @transform_7, window_bounds = array<i64: 4>}, {transform_indices = @transform_8, window_bounds = array<i64: 1, 4, 2, 128>}]} {
    %c0 = arith.constant 0 : index
    %c0_0 = arith.constant 0 : index
    %c0_1 = arith.constant 0 : index
    %c0_2 = arith.constant 0 : index
    %0 = vector.load %arg2[%c0, %c0_0, %c0_1, %c0_2] : memref<1x4x2x128xf32, #tpu.memory_space<vmem>>, vector<1x1x2x128xf32>
    %1 = vector.shape_cast %0 : vector<1x1x2x128xf32> to vector<2x128xf32>
    %c0_3 = arith.constant 0 : index
    %c1 = arith.constant 1 : index
    %c0_4 = arith.constant 0 : index
    %c0_5 = arith.constant 0 : index
    %2 = vector.load %arg2[%c0_3, %c1, %c0_4, %c0_5] : memref<1x4x2x128xf32, #tpu.memory_space<vmem>>, vector<1x1x2x128xf32>
    %3 = vector.shape_cast %2 : vector<1x1x2x128xf32> to vector<2x128xf32>
    %c0_6 = arith.constant 0 : index
    %c2 = arith.constant 2 : index
    %c0_7 = arith.constant 0 : index
    %c0_8 = arith.constant 0 : index
    %4 = vector.load %arg2[%c0_6, %c2, %c0_7, %c0_8] : memref<1x4x2x128xf32, #tpu.memory_space<vmem>>, vector<1x1x2x128xf32>
    %5 = vector.shape_cast %4 : vector<1x1x2x128xf32> to vector<2x128xf32>
    %c0_9 = arith.constant 0 : index
    %c3 = arith.constant 3 : index
    %c0_10 = arith.constant 0 : index
    %c0_11 = arith.constant 0 : index
    %6 = vector.load %arg2[%c0_9, %c3, %c0_10, %c0_11] : memref<1x4x2x128xf32, #tpu.memory_space<vmem>>, vector<1x1x2x128xf32>
    %7 = vector.shape_cast %6 : vector<1x1x2x128xf32> to vector<2x128xf32>
    %c0_12 = arith.constant 0 : index
    %8 = memref.load %arg3[%c0_12] : memref<4xf32, #tpu.memory_space<smem>>
    %9 = vector.broadcast %8 : f32 to vector<2x128xf32>
    %10 = arith.mulf %9, %1 : vector<2x128xf32>
    %c1_13 = arith.constant 1 : index
    %11 = memref.load %arg3[%c1_13] : memref<4xf32, #tpu.memory_space<smem>>
    %12 = vector.broadcast %11 : f32 to vector<2x128xf32>
    %13 = arith.mulf %12, %3 : vector<2x128xf32>
    %14 = arith.addf %10, %13 : vector<2x128xf32>
    %c2_14 = arith.constant 2 : index
    %15 = memref.load %arg3[%c2_14] : memref<4xf32, #tpu.memory_space<smem>>
    %16 = vector.broadcast %15 : f32 to vector<2x128xf32>
    %17 = arith.mulf %16, %5 : vector<2x128xf32>
    %18 = arith.addf %14, %17 : vector<2x128xf32>
    %c3_15 = arith.constant 3 : index
    %19 = memref.load %arg3[%c3_15] : memref<4xf32, #tpu.memory_space<smem>>
    %20 = vector.broadcast %19 : f32 to vector<2x128xf32>
    %21 = arith.mulf %20, %7 : vector<2x128xf32>
    %22 = arith.addf %18, %21 : vector<2x128xf32>
    %23 = arith.negf %22 : vector<2x128xf32>
    %24 = math.exp %23 : vector<2x128xf32>
    %cst = arith.constant 1.000000e+00 : f32
    %25 = vector.broadcast %cst : f32 to vector<2x128xf32>
    %26 = arith.addf %25, %24 : vector<2x128xf32>
    %27 = arith.divf %25, %26 : vector<2x128xf32>
    %28 = arith.mulf %27, %1 : vector<2x128xf32>
    %29 = arith.mulf %27, %3 : vector<2x128xf32>
    %30 = arith.mulf %27, %5 : vector<2x128xf32>
    %31 = arith.mulf %27, %7 : vector<2x128xf32>
    %32 = arith.subf %1, %28 : vector<2x128xf32>
    %33 = arith.subf %3, %29 : vector<2x128xf32>
    %34 = arith.subf %5, %30 : vector<2x128xf32>
    %35 = arith.subf %7, %31 : vector<2x128xf32>
    %c0_16 = arith.constant 0 : index
    %c0_17 = arith.constant 0 : index
    %36 = memref.load %arg4[%c0_16, %c0_17] : memref<4x4xf32, #tpu.memory_space<smem>>
    %37 = vector.broadcast %36 : f32 to vector<2x128xf32>
    %38 = arith.mulf %37, %28 : vector<2x128xf32>
    %c0_18 = arith.constant 0 : index
    %c1_19 = arith.constant 1 : index
    %39 = memref.load %arg4[%c0_18, %c1_19] : memref<4x4xf32, #tpu.memory_space<smem>>
    %40 = vector.broadcast %39 : f32 to vector<2x128xf32>
    %41 = arith.mulf %40, %29 : vector<2x128xf32>
    %42 = arith.addf %38, %41 : vector<2x128xf32>
    %c0_20 = arith.constant 0 : index
    %c2_21 = arith.constant 2 : index
    %43 = memref.load %arg4[%c0_20, %c2_21] : memref<4x4xf32, #tpu.memory_space<smem>>
    %44 = vector.broadcast %43 : f32 to vector<2x128xf32>
    %45 = arith.mulf %44, %30 : vector<2x128xf32>
    %46 = arith.addf %42, %45 : vector<2x128xf32>
    %c0_22 = arith.constant 0 : index
    %c3_23 = arith.constant 3 : index
    %47 = memref.load %arg4[%c0_22, %c3_23] : memref<4x4xf32, #tpu.memory_space<smem>>
    %48 = vector.broadcast %47 : f32 to vector<2x128xf32>
    %49 = arith.mulf %48, %31 : vector<2x128xf32>
    %50 = arith.addf %46, %49 : vector<2x128xf32>
    %c0_24 = arith.constant 0 : index
    %51 = memref.load %arg5[%c0_24] : memref<4xf32, #tpu.memory_space<smem>>
    %52 = vector.broadcast %51 : f32 to vector<2x128xf32>
    %53 = arith.addf %50, %52 : vector<2x128xf32>
    %cst_25 = arith.constant 0.000000e+00 : f32
    %54 = vector.broadcast %cst_25 : f32 to vector<2x128xf32>
    %55 = arith.maximumf %53, %54 : vector<2x128xf32>
    %c1_26 = arith.constant 1 : index
    %c0_27 = arith.constant 0 : index
    %56 = memref.load %arg4[%c1_26, %c0_27] : memref<4x4xf32, #tpu.memory_space<smem>>
    %57 = vector.broadcast %56 : f32 to vector<2x128xf32>
    %58 = arith.mulf %57, %28 : vector<2x128xf32>
    %c1_28 = arith.constant 1 : index
    %c1_29 = arith.constant 1 : index
    %59 = memref.load %arg4[%c1_28, %c1_29] : memref<4x4xf32, #tpu.memory_space<smem>>
    %60 = vector.broadcast %59 : f32 to vector<2x128xf32>
    %61 = arith.mulf %60, %29 : vector<2x128xf32>
    %62 = arith.addf %58, %61 : vector<2x128xf32>
    %c1_30 = arith.constant 1 : index
    %c2_31 = arith.constant 2 : index
    %63 = memref.load %arg4[%c1_30, %c2_31] : memref<4x4xf32, #tpu.memory_space<smem>>
    %64 = vector.broadcast %63 : f32 to vector<2x128xf32>
    %65 = arith.mulf %64, %30 : vector<2x128xf32>
    %66 = arith.addf %62, %65 : vector<2x128xf32>
    %c1_32 = arith.constant 1 : index
    %c3_33 = arith.constant 3 : index
    %67 = memref.load %arg4[%c1_32, %c3_33] : memref<4x4xf32, #tpu.memory_space<smem>>
    %68 = vector.broadcast %67 : f32 to vector<2x128xf32>
    %69 = arith.mulf %68, %31 : vector<2x128xf32>
    %70 = arith.addf %66, %69 : vector<2x128xf32>
    %c1_34 = arith.constant 1 : index
    %71 = memref.load %arg5[%c1_34] : memref<4xf32, #tpu.memory_space<smem>>
    %72 = vector.broadcast %71 : f32 to vector<2x128xf32>
    %73 = arith.addf %70, %72 : vector<2x128xf32>
    %cst_35 = arith.constant 0.000000e+00 : f32
    %74 = vector.broadcast %cst_35 : f32 to vector<2x128xf32>
    %75 = arith.maximumf %73, %74 : vector<2x128xf32>
    %c2_36 = arith.constant 2 : index
    %c0_37 = arith.constant 0 : index
    %76 = memref.load %arg4[%c2_36, %c0_37] : memref<4x4xf32, #tpu.memory_space<smem>>
    %77 = vector.broadcast %76 : f32 to vector<2x128xf32>
    %78 = arith.mulf %77, %28 : vector<2x128xf32>
    %c2_38 = arith.constant 2 : index
    %c1_39 = arith.constant 1 : index
    %79 = memref.load %arg4[%c2_38, %c1_39] : memref<4x4xf32, #tpu.memory_space<smem>>
    %80 = vector.broadcast %79 : f32 to vector<2x128xf32>
    %81 = arith.mulf %80, %29 : vector<2x128xf32>
    %82 = arith.addf %78, %81 : vector<2x128xf32>
    %c2_40 = arith.constant 2 : index
    %c2_41 = arith.constant 2 : index
    %83 = memref.load %arg4[%c2_40, %c2_41] : memref<4x4xf32, #tpu.memory_space<smem>>
    %84 = vector.broadcast %83 : f32 to vector<2x128xf32>
    %85 = arith.mulf %84, %30 : vector<2x128xf32>
    %86 = arith.addf %82, %85 : vector<2x128xf32>
    %c2_42 = arith.constant 2 : index
    %c3_43 = arith.constant 3 : index
    %87 = memref.load %arg4[%c2_42, %c3_43] : memref<4x4xf32, #tpu.memory_space<smem>>
    %88 = vector.broadcast %87 : f32 to vector<2x128xf32>
    %89 = arith.mulf %88, %31 : vector<2x128xf32>
    %90 = arith.addf %86, %89 : vector<2x128xf32>
    %c2_44 = arith.constant 2 : index
    %91 = memref.load %arg5[%c2_44] : memref<4xf32, #tpu.memory_space<smem>>
    %92 = vector.broadcast %91 : f32 to vector<2x128xf32>
    %93 = arith.addf %90, %92 : vector<2x128xf32>
    %cst_45 = arith.constant 0.000000e+00 : f32
    %94 = vector.broadcast %cst_45 : f32 to vector<2x128xf32>
    %95 = arith.maximumf %93, %94 : vector<2x128xf32>
    %c3_46 = arith.constant 3 : index
    %c0_47 = arith.constant 0 : index
    %96 = memref.load %arg4[%c3_46, %c0_47] : memref<4x4xf32, #tpu.memory_space<smem>>
    %97 = vector.broadcast %96 : f32 to vector<2x128xf32>
    %98 = arith.mulf %97, %28 : vector<2x128xf32>
    %c3_48 = arith.constant 3 : index
    %c1_49 = arith.constant 1 : index
    %99 = memref.load %arg4[%c3_48, %c1_49] : memref<4x4xf32, #tpu.memory_space<smem>>
    %100 = vector.broadcast %99 : f32 to vector<2x128xf32>
    %101 = arith.mulf %100, %29 : vector<2x128xf32>
    %102 = arith.addf %98, %101 : vector<2x128xf32>
    %c3_50 = arith.constant 3 : index
    %c2_51 = arith.constant 2 : index
    %103 = memref.load %arg4[%c3_50, %c2_51] : memref<4x4xf32, #tpu.memory_space<smem>>
    %104 = vector.broadcast %103 : f32 to vector<2x128xf32>
    %105 = arith.mulf %104, %30 : vector<2x128xf32>
    %106 = arith.addf %102, %105 : vector<2x128xf32>
    %c3_52 = arith.constant 3 : index
    %c3_53 = arith.constant 3 : index
    %107 = memref.load %arg4[%c3_52, %c3_53] : memref<4x4xf32, #tpu.memory_space<smem>>
    %108 = vector.broadcast %107 : f32 to vector<2x128xf32>
    %109 = arith.mulf %108, %31 : vector<2x128xf32>
    %110 = arith.addf %106, %109 : vector<2x128xf32>
    %c3_54 = arith.constant 3 : index
    %111 = memref.load %arg5[%c3_54] : memref<4xf32, #tpu.memory_space<smem>>
    %112 = vector.broadcast %111 : f32 to vector<2x128xf32>
    %113 = arith.addf %110, %112 : vector<2x128xf32>
    %cst_55 = arith.constant 0.000000e+00 : f32
    %114 = vector.broadcast %cst_55 : f32 to vector<2x128xf32>
    %115 = arith.maximumf %113, %114 : vector<2x128xf32>
    %c0_56 = arith.constant 0 : index
    %c0_57 = arith.constant 0 : index
    %116 = memref.load %arg6[%c0_56, %c0_57] : memref<4x4xf32, #tpu.memory_space<smem>>
    %117 = vector.broadcast %116 : f32 to vector<2x128xf32>
    %118 = arith.mulf %117, %32 : vector<2x128xf32>
    %c0_58 = arith.constant 0 : index
    %c1_59 = arith.constant 1 : index
    %119 = memref.load %arg6[%c0_58, %c1_59] : memref<4x4xf32, #tpu.memory_space<smem>>
    %120 = vector.broadcast %119 : f32 to vector<2x128xf32>
    %121 = arith.mulf %120, %33 : vector<2x128xf32>
    %122 = arith.addf %118, %121 : vector<2x128xf32>
    %c0_60 = arith.constant 0 : index
    %c2_61 = arith.constant 2 : index
    %123 = memref.load %arg6[%c0_60, %c2_61] : memref<4x4xf32, #tpu.memory_space<smem>>
    %124 = vector.broadcast %123 : f32 to vector<2x128xf32>
    %125 = arith.mulf %124, %34 : vector<2x128xf32>
    %126 = arith.addf %122, %125 : vector<2x128xf32>
    %c0_62 = arith.constant 0 : index
    %c3_63 = arith.constant 3 : index
    %127 = memref.load %arg6[%c0_62, %c3_63] : memref<4x4xf32, #tpu.memory_space<smem>>
    %128 = vector.broadcast %127 : f32 to vector<2x128xf32>
    %129 = arith.mulf %128, %35 : vector<2x128xf32>
    %130 = arith.addf %126, %129 : vector<2x128xf32>
    %c0_64 = arith.constant 0 : index
    %131 = memref.load %arg7[%c0_64] : memref<4xf32, #tpu.memory_space<smem>>
    %132 = vector.broadcast %131 : f32 to vector<2x128xf32>
    %133 = arith.addf %130, %132 : vector<2x128xf32>
    %cst_65 = arith.constant 0.000000e+00 : f32
    %134 = vector.broadcast %cst_65 : f32 to vector<2x128xf32>
    %135 = arith.maximumf %133, %134 : vector<2x128xf32>
    %c1_66 = arith.constant 1 : index
    %c0_67 = arith.constant 0 : index
    %136 = memref.load %arg6[%c1_66, %c0_67] : memref<4x4xf32, #tpu.memory_space<smem>>
    %137 = vector.broadcast %136 : f32 to vector<2x128xf32>
    %138 = arith.mulf %137, %32 : vector<2x128xf32>
    %c1_68 = arith.constant 1 : index
    %c1_69 = arith.constant 1 : index
    %139 = memref.load %arg6[%c1_68, %c1_69] : memref<4x4xf32, #tpu.memory_space<smem>>
    %140 = vector.broadcast %139 : f32 to vector<2x128xf32>
    %141 = arith.mulf %140, %33 : vector<2x128xf32>
    %142 = arith.addf %138, %141 : vector<2x128xf32>
    %c1_70 = arith.constant 1 : index
    %c2_71 = arith.constant 2 : index
    %143 = memref.load %arg6[%c1_70, %c2_71] : memref<4x4xf32, #tpu.memory_space<smem>>
    %144 = vector.broadcast %143 : f32 to vector<2x128xf32>
    %145 = arith.mulf %144, %34 : vector<2x128xf32>
    %146 = arith.addf %142, %145 : vector<2x128xf32>
    %c1_72 = arith.constant 1 : index
    %c3_73 = arith.constant 3 : index
    %147 = memref.load %arg6[%c1_72, %c3_73] : memref<4x4xf32, #tpu.memory_space<smem>>
    %148 = vector.broadcast %147 : f32 to vector<2x128xf32>
    %149 = arith.mulf %148, %35 : vector<2x128xf32>
    %150 = arith.addf %146, %149 : vector<2x128xf32>
    %c1_74 = arith.constant 1 : index
    %151 = memref.load %arg7[%c1_74] : memref<4xf32, #tpu.memory_space<smem>>
    %152 = vector.broadcast %151 : f32 to vector<2x128xf32>
    %153 = arith.addf %150, %152 : vector<2x128xf32>
    %cst_75 = arith.constant 0.000000e+00 : f32
    %154 = vector.broadcast %cst_75 : f32 to vector<2x128xf32>
    %155 = arith.maximumf %153, %154 : vector<2x128xf32>
    %c2_76 = arith.constant 2 : index
    %c0_77 = arith.constant 0 : index
    %156 = memref.load %arg6[%c2_76, %c0_77] : memref<4x4xf32, #tpu.memory_space<smem>>
    %157 = vector.broadcast %156 : f32 to vector<2x128xf32>
    %158 = arith.mulf %157, %32 : vector<2x128xf32>
    %c2_78 = arith.constant 2 : index
    %c1_79 = arith.constant 1 : index
    %159 = memref.load %arg6[%c2_78, %c1_79] : memref<4x4xf32, #tpu.memory_space<smem>>
    %160 = vector.broadcast %159 : f32 to vector<2x128xf32>
    %161 = arith.mulf %160, %33 : vector<2x128xf32>
    %162 = arith.addf %158, %161 : vector<2x128xf32>
    %c2_80 = arith.constant 2 : index
    %c2_81 = arith.constant 2 : index
    %163 = memref.load %arg6[%c2_80, %c2_81] : memref<4x4xf32, #tpu.memory_space<smem>>
    %164 = vector.broadcast %163 : f32 to vector<2x128xf32>
    %165 = arith.mulf %164, %34 : vector<2x128xf32>
    %166 = arith.addf %162, %165 : vector<2x128xf32>
    %c2_82 = arith.constant 2 : index
    %c3_83 = arith.constant 3 : index
    %167 = memref.load %arg6[%c2_82, %c3_83] : memref<4x4xf32, #tpu.memory_space<smem>>
    %168 = vector.broadcast %167 : f32 to vector<2x128xf32>
    %169 = arith.mulf %168, %35 : vector<2x128xf32>
    %170 = arith.addf %166, %169 : vector<2x128xf32>
    %c2_84 = arith.constant 2 : index
    %171 = memref.load %arg7[%c2_84] : memref<4xf32, #tpu.memory_space<smem>>
    %172 = vector.broadcast %171 : f32 to vector<2x128xf32>
    %173 = arith.addf %170, %172 : vector<2x128xf32>
    %cst_85 = arith.constant 0.000000e+00 : f32
    %174 = vector.broadcast %cst_85 : f32 to vector<2x128xf32>
    %175 = arith.maximumf %173, %174 : vector<2x128xf32>
    %c3_86 = arith.constant 3 : index
    %c0_87 = arith.constant 0 : index
    %176 = memref.load %arg6[%c3_86, %c0_87] : memref<4x4xf32, #tpu.memory_space<smem>>
    %177 = vector.broadcast %176 : f32 to vector<2x128xf32>
    %178 = arith.mulf %177, %32 : vector<2x128xf32>
    %c3_88 = arith.constant 3 : index
    %c1_89 = arith.constant 1 : index
    %179 = memref.load %arg6[%c3_88, %c1_89] : memref<4x4xf32, #tpu.memory_space<smem>>
    %180 = vector.broadcast %179 : f32 to vector<2x128xf32>
    %181 = arith.mulf %180, %33 : vector<2x128xf32>
    %182 = arith.addf %178, %181 : vector<2x128xf32>
    %c3_90 = arith.constant 3 : index
    %c2_91 = arith.constant 2 : index
    %183 = memref.load %arg6[%c3_90, %c2_91] : memref<4x4xf32, #tpu.memory_space<smem>>
    %184 = vector.broadcast %183 : f32 to vector<2x128xf32>
    %185 = arith.mulf %184, %34 : vector<2x128xf32>
    %186 = arith.addf %182, %185 : vector<2x128xf32>
    %c3_92 = arith.constant 3 : index
    %c3_93 = arith.constant 3 : index
    %187 = memref.load %arg6[%c3_92, %c3_93] : memref<4x4xf32, #tpu.memory_space<smem>>
    %188 = vector.broadcast %187 : f32 to vector<2x128xf32>
    %189 = arith.mulf %188, %35 : vector<2x128xf32>
    %190 = arith.addf %186, %189 : vector<2x128xf32>
    %c3_94 = arith.constant 3 : index
    %191 = memref.load %arg7[%c3_94] : memref<4xf32, #tpu.memory_space<smem>>
    %192 = vector.broadcast %191 : f32 to vector<2x128xf32>
    %193 = arith.addf %190, %192 : vector<2x128xf32>
    %cst_95 = arith.constant 0.000000e+00 : f32
    %194 = vector.broadcast %cst_95 : f32 to vector<2x128xf32>
    %195 = arith.maximumf %193, %194 : vector<2x128xf32>
    %196 = arith.addf %55, %135 : vector<2x128xf32>
    %197 = arith.addf %75, %155 : vector<2x128xf32>
    %198 = arith.addf %95, %175 : vector<2x128xf32>
    %199 = arith.addf %115, %195 : vector<2x128xf32>
    %c0_96 = arith.constant 0 : index
    %c0_97 = arith.constant 0 : index
    %200 = memref.load %arg8[%c0_96, %c0_97] : memref<4x4xf32, #tpu.memory_space<smem>>
    %201 = vector.broadcast %200 : f32 to vector<2x128xf32>
    %202 = arith.mulf %201, %196 : vector<2x128xf32>
    %c0_98 = arith.constant 0 : index
    %c1_99 = arith.constant 1 : index
    %203 = memref.load %arg8[%c0_98, %c1_99] : memref<4x4xf32, #tpu.memory_space<smem>>
    %204 = vector.broadcast %203 : f32 to vector<2x128xf32>
    %205 = arith.mulf %204, %197 : vector<2x128xf32>
    %206 = arith.addf %202, %205 : vector<2x128xf32>
    %c0_100 = arith.constant 0 : index
    %c2_101 = arith.constant 2 : index
    %207 = memref.load %arg8[%c0_100, %c2_101] : memref<4x4xf32, #tpu.memory_space<smem>>
    %208 = vector.broadcast %207 : f32 to vector<2x128xf32>
    %209 = arith.mulf %208, %198 : vector<2x128xf32>
    %210 = arith.addf %206, %209 : vector<2x128xf32>
    %c0_102 = arith.constant 0 : index
    %c3_103 = arith.constant 3 : index
    %211 = memref.load %arg8[%c0_102, %c3_103] : memref<4x4xf32, #tpu.memory_space<smem>>
    %212 = vector.broadcast %211 : f32 to vector<2x128xf32>
    %213 = arith.mulf %212, %199 : vector<2x128xf32>
    %214 = arith.addf %210, %213 : vector<2x128xf32>
    %c0_104 = arith.constant 0 : index
    %215 = memref.load %arg9[%c0_104] : memref<4xf32, #tpu.memory_space<smem>>
    %216 = vector.broadcast %215 : f32 to vector<2x128xf32>
    %217 = arith.addf %214, %216 : vector<2x128xf32>
    %cst_105 = arith.constant 0.000000e+00 : f32
    %218 = vector.broadcast %cst_105 : f32 to vector<2x128xf32>
    %219 = arith.maximumf %217, %218 : vector<2x128xf32>
    %c1_106 = arith.constant 1 : index
    %c0_107 = arith.constant 0 : index
    %220 = memref.load %arg8[%c1_106, %c0_107] : memref<4x4xf32, #tpu.memory_space<smem>>
    %221 = vector.broadcast %220 : f32 to vector<2x128xf32>
    %222 = arith.mulf %221, %196 : vector<2x128xf32>
    %c1_108 = arith.constant 1 : index
    %c1_109 = arith.constant 1 : index
    %223 = memref.load %arg8[%c1_108, %c1_109] : memref<4x4xf32, #tpu.memory_space<smem>>
    %224 = vector.broadcast %223 : f32 to vector<2x128xf32>
    %225 = arith.mulf %224, %197 : vector<2x128xf32>
    %226 = arith.addf %222, %225 : vector<2x128xf32>
    %c1_110 = arith.constant 1 : index
    %c2_111 = arith.constant 2 : index
    %227 = memref.load %arg8[%c1_110, %c2_111] : memref<4x4xf32, #tpu.memory_space<smem>>
    %228 = vector.broadcast %227 : f32 to vector<2x128xf32>
    %229 = arith.mulf %228, %198 : vector<2x128xf32>
    %230 = arith.addf %226, %229 : vector<2x128xf32>
    %c1_112 = arith.constant 1 : index
    %c3_113 = arith.constant 3 : index
    %231 = memref.load %arg8[%c1_112, %c3_113] : memref<4x4xf32, #tpu.memory_space<smem>>
    %232 = vector.broadcast %231 : f32 to vector<2x128xf32>
    %233 = arith.mulf %232, %199 : vector<2x128xf32>
    %234 = arith.addf %230, %233 : vector<2x128xf32>
    %c1_114 = arith.constant 1 : index
    %235 = memref.load %arg9[%c1_114] : memref<4xf32, #tpu.memory_space<smem>>
    %236 = vector.broadcast %235 : f32 to vector<2x128xf32>
    %237 = arith.addf %234, %236 : vector<2x128xf32>
    %cst_115 = arith.constant 0.000000e+00 : f32
    %238 = vector.broadcast %cst_115 : f32 to vector<2x128xf32>
    %239 = arith.maximumf %237, %238 : vector<2x128xf32>
    %c2_116 = arith.constant 2 : index
    %c0_117 = arith.constant 0 : index
    %240 = memref.load %arg8[%c2_116, %c0_117] : memref<4x4xf32, #tpu.memory_space<smem>>
    %241 = vector.broadcast %240 : f32 to vector<2x128xf32>
    %242 = arith.mulf %241, %196 : vector<2x128xf32>
    %c2_118 = arith.constant 2 : index
    %c1_119 = arith.constant 1 : index
    %243 = memref.load %arg8[%c2_118, %c1_119] : memref<4x4xf32, #tpu.memory_space<smem>>
    %244 = vector.broadcast %243 : f32 to vector<2x128xf32>
    %245 = arith.mulf %244, %197 : vector<2x128xf32>
    %246 = arith.addf %242, %245 : vector<2x128xf32>
    %c2_120 = arith.constant 2 : index
    %c2_121 = arith.constant 2 : index
    %247 = memref.load %arg8[%c2_120, %c2_121] : memref<4x4xf32, #tpu.memory_space<smem>>
    %248 = vector.broadcast %247 : f32 to vector<2x128xf32>
    %249 = arith.mulf %248, %198 : vector<2x128xf32>
    %250 = arith.addf %246, %249 : vector<2x128xf32>
    %c2_122 = arith.constant 2 : index
    %c3_123 = arith.constant 3 : index
    %251 = memref.load %arg8[%c2_122, %c3_123] : memref<4x4xf32, #tpu.memory_space<smem>>
    %252 = vector.broadcast %251 : f32 to vector<2x128xf32>
    %253 = arith.mulf %252, %199 : vector<2x128xf32>
    %254 = arith.addf %250, %253 : vector<2x128xf32>
    %c2_124 = arith.constant 2 : index
    %255 = memref.load %arg9[%c2_124] : memref<4xf32, #tpu.memory_space<smem>>
    %256 = vector.broadcast %255 : f32 to vector<2x128xf32>
    %257 = arith.addf %254, %256 : vector<2x128xf32>
    %cst_125 = arith.constant 0.000000e+00 : f32
    %258 = vector.broadcast %cst_125 : f32 to vector<2x128xf32>
    %259 = arith.maximumf %257, %258 : vector<2x128xf32>
    %c3_126 = arith.constant 3 : index
    %c0_127 = arith.constant 0 : index
    %260 = memref.load %arg8[%c3_126, %c0_127] : memref<4x4xf32, #tpu.memory_space<smem>>
    %261 = vector.broadcast %260 : f32 to vector<2x128xf32>
    %262 = arith.mulf %261, %196 : vector<2x128xf32>
    %c3_128 = arith.constant 3 : index
    %c1_129 = arith.constant 1 : index
    %263 = memref.load %arg8[%c3_128, %c1_129] : memref<4x4xf32, #tpu.memory_space<smem>>
    %264 = vector.broadcast %263 : f32 to vector<2x128xf32>
    %265 = arith.mulf %264, %197 : vector<2x128xf32>
    %266 = arith.addf %262, %265 : vector<2x128xf32>
    %c3_130 = arith.constant 3 : index
    %c2_131 = arith.constant 2 : index
    %267 = memref.load %arg8[%c3_130, %c2_131] : memref<4x4xf32, #tpu.memory_space<smem>>
    %268 = vector.broadcast %267 : f32 to vector<2x128xf32>
    %269 = arith.mulf %268, %198 : vector<2x128xf32>
    %270 = arith.addf %266, %269 : vector<2x128xf32>
    %c3_132 = arith.constant 3 : index
    %c3_133 = arith.constant 3 : index
    %271 = memref.load %arg8[%c3_132, %c3_133] : memref<4x4xf32, #tpu.memory_space<smem>>
    %272 = vector.broadcast %271 : f32 to vector<2x128xf32>
    %273 = arith.mulf %272, %199 : vector<2x128xf32>
    %274 = arith.addf %270, %273 : vector<2x128xf32>
    %c3_134 = arith.constant 3 : index
    %275 = memref.load %arg9[%c3_134] : memref<4xf32, #tpu.memory_space<smem>>
    %276 = vector.broadcast %275 : f32 to vector<2x128xf32>
    %277 = arith.addf %274, %276 : vector<2x128xf32>
    %cst_135 = arith.constant 0.000000e+00 : f32
    %278 = vector.broadcast %cst_135 : f32 to vector<2x128xf32>
    %279 = arith.maximumf %277, %278 : vector<2x128xf32>
    %c0_136 = arith.constant 0 : index
    %c0_137 = arith.constant 0 : index
    %c0_138 = arith.constant 0 : index
    %c0_139 = arith.constant 0 : index
    %280 = vector.load %arg10[%c0_136, %c0_137, %c0_138, %c0_139] : memref<1x4x2x128xf32, #tpu.memory_space<vmem>>, vector<1x1x2x128xf32>
    %281 = vector.shape_cast %280 : vector<1x1x2x128xf32> to vector<2x128xf32>
    %282 = vector.shape_cast %219 : vector<2x128xf32> to vector<1x1x2x128xf32>
    tpu.vector_store %arg10[%c0_136, %c0_137, %c0_138, %c0_139], %282 {strides = array<i32>} : memref<1x4x2x128xf32, #tpu.memory_space<vmem>>, vector<1x1x2x128xf32>,
    %c0_140 = arith.constant 0 : index
    %c1_141 = arith.constant 1 : index
    %c0_142 = arith.constant 0 : index
    %c0_143 = arith.constant 0 : index
    %283 = vector.load %arg10[%c0_140, %c1_141, %c0_142, %c0_143] : memref<1x4x2x128xf32, #tpu.memory_space<vmem>>, vector<1x1x2x128xf32>
    %284 = vector.shape_cast %283 : vector<1x1x2x128xf32> to vector<2x128xf32>
    %285 = vector.shape_cast %239 : vector<2x128xf32> to vector<1x1x2x128xf32>
    tpu.vector_store %arg10[%c0_140, %c1_141, %c0_142, %c0_143], %285 {strides = array<i32>} : memref<1x4x2x128xf32, #tpu.memory_space<vmem>>, vector<1x1x2x128xf32>,
    %c0_144 = arith.constant 0 : index
    %c2_145 = arith.constant 2 : index
    %c0_146 = arith.constant 0 : index
    %c0_147 = arith.constant 0 : index
    %286 = vector.load %arg10[%c0_144, %c2_145, %c0_146, %c0_147] : memref<1x4x2x128xf32, #tpu.memory_space<vmem>>, vector<1x1x2x128xf32>
    %287 = vector.shape_cast %286 : vector<1x1x2x128xf32> to vector<2x128xf32>
    %288 = vector.shape_cast %259 : vector<2x128xf32> to vector<1x1x2x128xf32>
    tpu.vector_store %arg10[%c0_144, %c2_145, %c0_146, %c0_147], %288 {strides = array<i32>} : memref<1x4x2x128xf32, #tpu.memory_space<vmem>>, vector<1x1x2x128xf32>,
    %c0_148 = arith.constant 0 : index
    %c3_149 = arith.constant 3 : index
    %c0_150 = arith.constant 0 : index
    %c0_151 = arith.constant 0 : index
    %289 = vector.load %arg10[%c0_148, %c3_149, %c0_150, %c0_151] : memref<1x4x2x128xf32, #tpu.memory_space<vmem>>, vector<1x1x2x128xf32>
    %290 = vector.shape_cast %289 : vector<1x1x2x128xf32> to vector<2x128xf32>
    %291 = vector.shape_cast %279 : vector<2x128xf32> to vector<1x1x2x128xf32>
    tpu.vector_store %arg10[%c0_148, %c3_149, %c0_150, %c0_151], %291 {strides = array<i32>} : memref<1x4x2x128xf32, #tpu.memory_space<vmem>>, vector<1x1x2x128xf32>,
    return
  }
  func.func @transform_0(%arg0: i32, %arg1: i32) -> (i32, i32, i32, i32) {
    %c0_i32 = arith.constant 0 : i32
    %c0_i32_0 = arith.constant 0 : i32
    %c0_i32_1 = arith.constant 0 : i32
    return %arg0, %c0_i32, %arg1, %c0_i32_0 : i32, i32, i32, i32
  }
  func.func @transform_1(%arg0: i32, %arg1: i32) -> i32 {
    %c0_i32 = arith.constant 0 : i32
    %c0_i32_0 = arith.constant 0 : i32
    return %c0_i32 : i32
  }
  func.func @transform_2(%arg0: i32, %arg1: i32) -> (i32, i32) {
    %c0_i32 = arith.constant 0 : i32
    %c0_i32_0 = arith.constant 0 : i32
    %c0_i32_1 = arith.constant 0 : i32
    return %c0_i32, %c0_i32_0 : i32, i32
  }
  func.func @transform_3(%arg0: i32, %arg1: i32) -> i32 {
    %c0_i32 = arith.constant 0 : i32
    %c0_i32_0 = arith.constant 0 : i32
    return %c0_i32 : i32
  }
  func.func @transform_4(%arg0: i32, %arg1: i32) -> (i32, i32) {
    %c0_i32 = arith.constant 0 : i32
    %c0_i32_0 = arith.constant 0 : i32
    %c0_i32_1 = arith.constant 0 : i32
    return %c0_i32, %c0_i32_0 : i32, i32
  }
  func.func @transform_5(%arg0: i32, %arg1: i32) -> i32 {
    %c0_i32 = arith.constant 0 : i32
    %c0_i32_0 = arith.constant 0 : i32
    return %c0_i32 : i32
  }
  func.func @transform_6(%arg0: i32, %arg1: i32) -> (i32, i32) {
    %c0_i32 = arith.constant 0 : i32
    %c0_i32_0 = arith.constant 0 : i32
    %c0_i32_1 = arith.constant 0 : i32
    return %c0_i32, %c0_i32_0 : i32, i32
  }
  func.func @transform_7(%arg0: i32, %arg1: i32) -> i32 {
    %c0_i32 = arith.constant 0 : i32
    %c0_i32_0 = arith.constant 0 : i32
    return %c0_i32 : i32
  }
  func.func @transform_8(%arg0: i32, %arg1: i32) -> (i32, i32, i32, i32) {
    %c0_i32 = arith.constant 0 : i32
    %c0_i32_0 = arith.constant 0 : i32
    %c0_i32_1 = arith.constant 0 : i32
    return %arg0, %c0_i32, %arg1, %c0_i32_0 : i32, i32, i32, i32
  }
}

</mosaic_0001>

<bundles_post_ra>
// kernel: _srm_folded.1
= control target key start
LH: loop header
LB: loop body
LE: loop exit
PB: predicated region body
PF: predicated region fallthrough
CT: control target
= control target key end

     0   :  { %s1638_s0 = inlined_call_operand.vmem [shape: f32[2,4,2,128], index: 0, kind: input, shape index: {}]   ;;  %s1639_s1 = inlined_call_operand.vmem [shape: f32[4], index: 1, kind: input, shape index: {}]   ;;  %s1640_s2 = inlined_call_operand.vmem [shape: f32[4,4], index: 2, kind: input, shape index: {}]   ;;  %s1641_s3 = inlined_call_operand.vmem [shape: f32[4], index: 3, kind: input, shape index: {}]   ;;  %s1642_s4 = inlined_call_operand.vmem [shape: f32[4,4], index: 4, kind: input, shape index: {}]   ;;  %s1643_s5 = inlined_call_operand.vmem [shape: f32[4], index: 5, kind: input, shape index: {}]   ;;  %s1644_s6 = inlined_call_operand.vmem [shape: f32[4,4], index: 6, kind: input, shape index: {}]   ;;  %s1645_s7 = inlined_call_operand.vmem [shape: f32[4], index: 7, kind: input, shape index: {}]   ;;  %s1646_s8 = inlined_call_operand.vmem [shape: f32[2,4,2,128], index: 8, kind: output, shape index: {}]  }
   0x1   :  { %1657 = sst [smem:[#allocation25_spill]] %s1638_s0 }
   0x2   :  { %1658 = sst [smem:[#allocation26_spill]] %s1639_s1 }
   0x3   :  { %1659 = sst [smem:[#allocation27_spill]] %s1640_s2 }
   0x4   :  { %1660 = sst [smem:[#allocation28_spill]] %s1641_s3 }
   0x5   :  { %1661 = sst [smem:[#allocation29_spill]] %s1642_s4 }
   0x6   :  { %1662 = sst [smem:[#allocation30_spill]] %s1643_s5 }
   0x7   :  { %1663 = sst [smem:[#allocation31_spill]] %s1644_s6 }
   0x8   :  { %1664 = sst [smem:[#allocation32_spill]] %s1645_s7 }
   0x9   :  { %1665 = sst [smem:[#allocation33_spill]] %s1646_s8 }
   0xa   :  { %13 = vsyncpa [#allocation3], 0 }
   0xb   :  { %14 = vsyncpa [#allocation5], 0 }
   0xc   :  { %15 = vsyncpa [#allocation8], 0 }
   0xd   :  { %16 = vsyncpa [#allocation11], 0  ;;  %s1241_s27 = smov 0   ;;  %s1243_s28 = smov 0  }
   0xe   :  { %s1245_s29 = smov 0  }
   0xf LB: > { %1666 = sst [smem:[#allocation17_spill]] %s1183_s28  ;;  %s854_s11 = sadd.s32 4294967295, %s1187_s29   ;;  %s1187_s29 = sphi %s1245_s29, %s22_s29   ;;  %s1183_s28 = sphi %s1243_s28, %s1697_s28   ;;  %s1179_s27 = sphi %s1241_s27, %s1696_s27  }
  0x10   : > { %1667 = sst [smem:[#allocation18_spill]] %s1187_s29  ;;  %p856_p0 = scmp.ge.s32.totalorder %s1187_s29, 1 }
  0x11   : > { %s1668_s2 = sld [smem:[#allocation27_spill]]  ;;  %p242_p1 = scmp.lt.s32.totalorder %s1187_s29, 3 }
  0x12   : > { %p1262_p2 = scmp.eq.s32.totalorder %s854_s11, 0  ;;  %s1671_s4 = sld [smem:[#allocation29_spill]] }
  0x13   : > { %p1266_p3 = pnand %p856_p0, %p242_p1  ;;  %s1672_s6 = sld [smem:[#allocation31_spill]] }
  0x14   : > { %s1669_s12 = scalar_select %p1262_p2, 1, 0 }
  0x15   : > { %s1670_s13 = scalar_select %p1266_p3, 1, 0 }
  0x16   : > { %p973_p4 = pneg %p1266_p3 }
  0x17   : > { %s266_s10 = sshll.u32 %s1668_s2, 4  ;;  %s267_s10 = int_to_ptr.vmem [resolvable:$true] %s266_s10 }
  0x18   : > { %s288_s16 = sshll.u32 %s1671_s4, 4  ;;  %p1282_p5 = pnand %p1262_p2, %p973_p4  ;;  %s289_s16 = int_to_ptr.vmem [resolvable:$true] %s288_s16 }
  0x19   : > { %s310_s19 = sshll.u32 %s1672_s6, 4  ;;  %s1044_s21 = scalar_lea.vmem %s267_s10, 64  ;;  %s1278_s19 = int_to_ptr.vmem [resolvable:$true] %s310_s19 }
  0x1a   : > { %p1045_p6 = scmp.ne.s32.totalorder %s267_s10, %s1044_s21  ;;  %p1288_p7 = pneg %p1282_p5 }
  0x1b   : > { %p1052_p10 = scmp.lt.s32.totalorder %s267_s10, %s267_s10  ;;  %p1053_p11 = scmp.lt.s32.totalorder %s1044_s21, %s1044_s21 }
  0x1c   : > { %p1047_p8 = pnand %p1288_p7, %p1045_p6 }
  0x1d   : > { %p1054_p12 = por %p1053_p11, %p1052_p10 }
  0x1e   : > { %p1048_p9 = pneg %p1047_p8 }
  0x20   : > { %p1055_p13 = pnand %p1054_p12, %p1048_p9 }
  0x22   : > { %1058 = shalt.err (!%p1055_p13)
}
  0x23   : > { %s1189_s23 = smov [#allocation4]   ;;  %s1059_s24 = scalar_lea.vmem %s289_s16, 64 }
  0x24   : > { %979 = dma.vmem_to_smem (!%p1282_p5), %s267_s10, 64, %s1189_s23, [#allocation5]  }
  0x25   : > { %p1060_p0 = scmp.ne.s32.totalorder %s289_s16, %s1059_s24  ;;  %p1067_p2 = scmp.lt.s32.totalorder %s289_s16, %s289_s16 }
  0x26   : > { %p1068_p3 = scmp.lt.s32.totalorder %s1059_s24, %s1059_s24 }
  0x27   : > { %p1062_p1 = pnand %p1060_p0, %p1288_p7 }
  0x28   : > { %p1069_p6 = por %p1068_p3, %p1067_p2 }
  0x29   : > { %p1063_p4 = pneg %p1062_p1 }
  0x2b   : > { %p1070_p8 = pnand %p1069_p6, %p1063_p4 }
  0x2d   : > { %1073 = shalt.err (!%p1070_p8)
}
  0x2e   : > { %s1190_s25 = smov [#allocation7]   ;;  %s1074_s26 = scalar_lea.vmem %s1278_s19, 64 }
  0x2f   : > { %985 = dma.vmem_to_smem (!%p1282_p5), %s289_s16, 64, %s1190_s25, [#allocation8]  }
  0x30   : > { %p1075_p9 = scmp.ne.s32.totalorder %s1278_s19, %s1074_s26  ;;  %p1082_p12 = scmp.lt.s32.totalorder %s1278_s19, %s1278_s19 }
  0x31   : > { %p1083_p13 = scmp.lt.s32.totalorder %s1074_s26, %s1074_s26 }
  0x32   : > { %p1077_p10 = pnand %p1075_p9, %p1288_p7 }
  0x33   : > { %p1084_p0 = por %p1083_p13, %p1082_p12 }
  0x34   : > { %p1078_p11 = pneg %p1077_p10 }
  0x36   : > { %p1085_p2 = pnand %p1084_p0, %p1078_p11 }
  0x38   : > { %1088 = shalt.err (!%p1085_p2)
}
  0x39   : > { %s1191_s30 = smov [#allocation10]   ;;  %s34_s9 = sadd.s32 1, %s1183_s28 }
  0x3a   : > { %991 = dma.vmem_to_smem (!%p1282_p5), %s1278_s19, 64, %s1191_s30, [#allocation11]  }
  0x3b   : > { %s1675_s1 = sld [smem:[#allocation26_spill]]  ;;  %p36_p3 = scmp.ge.s32.totalorder %s34_s9, 2 }
  0x3c   : > { %s1676_s3 = sld [smem:[#allocation28_spill]] }
  0x3d   : > { %s1699_s9 = smov (%p36_p3, %s34_s9), 0 }
  0x3e   : > { %1677 = sst [smem:[#allocation19_spill]] %s1699_s9 }
  0x41   : > { %s255_s14 = sshll.u32 %s1675_s1, 4  ;;  %s256_s14 = int_to_ptr.vmem [resolvable:$true] %s255_s14 }
  0x42   : > { %s277_s17 = sshll.u32 %s1676_s3, 4  ;;  %s1089_s18 = scalar_lea.vmem %s256_s14, 16  ;;  %s278_s17 = int_to_ptr.vmem [resolvable:$true] %s277_s17 }
  0x43   : > { %p1090_p1 = scmp.ne.s32.totalorder %s256_s14, %s1089_s18  ;;  %p1097_p8 = scmp.lt.s32.totalorder %s256_s14, %s256_s14 }
  0x44   : > { %p1098_p9 = scmp.lt.s32.totalorder %s1089_s18, %s1089_s18 }
  0x45   : > { %p1092_p4 = pnand %p1090_p1, %p1288_p7 }
  0x46   : > { %p1099_p10 = por %p1098_p9, %p1097_p8 }
  0x47   : > { %p1093_p6 = pneg %p1092_p4 }
  0x49   : > { %p1100_p11 = pnand %p1099_p10, %p1093_p6 }
  0x4b   : > { %1103 = shalt.err (!%p1100_p11)
}
  0x4c   : > { %s1192_s19 = smov [#allocation2]   ;;  %s1104_s21 = scalar_lea.vmem %s278_s17, 16 }
  0x4d   : > { %976 = dma.vmem_to_smem (!%p1282_p5), %s256_s14, 16, %s1192_s19, [#allocation3]  }
  0x4e   : > { %p1105_p12 = scmp.ne.s32.totalorder %s278_s17, %s1104_s21  ;;  %p1112_p2 = scmp.lt.s32.totalorder %s278_s17, %s278_s17 }
  0x4f   : > { %p1113_p3 = scmp.lt.s32.totalorder %s1104_s21, %s1104_s21 }
  0x50   : > { %p1107_p13 = pnand %p1105_p12, %p1288_p7 }
  0x51   : > { %p1114_p1 = por %p1113_p3, %p1112_p2 }
  0x52   : > { %p1108_p0 = pneg %p1107_p13 }
  0x54   : > { %p1115_p4 = pnand %p1114_p1, %p1108_p0 }
  0x56   : > { %1118 = shalt.err (!%p1115_p4)
}
  0x57   : > { %s1193_s23 = smov [#allocation6]   ;;  %s1678_s5 = sld [smem:[#allocation30_spill]] }
  0x58   : > { %982 = dma.vmem_to_smem (!%p1282_p5), %s278_s17, 16, %s1193_s23, [#allocation5]  }
  0x59   : > { %s1679_s7 = sld [smem:[#allocation32_spill]] }
  0x5d   : > { %s299_s26 = sshll.u32 %s1678_s5, 4  ;;  %s300_s26 = int_to_ptr.vmem [resolvable:$true] %s299_s26 }
  0x5e   : > { %s1119_s14 = scalar_lea.vmem %s300_s26, 16  ;;  %p1127_p10 = scmp.lt.s32.totalorder %s300_s26, %s300_s26 }
  0x5f   : > { %s321_s11 = sshll.u32 %s1679_s7, 4  ;;  %p1120_p6 = scmp.ne.s32.totalorder %s300_s26, %s1119_s14  ;;  %s322_s11 = int_to_ptr.vmem [resolvable:$true] %s321_s11 }
  0x60   : > { %p1128_p11 = scmp.lt.s32.totalorder %s1119_s14, %s1119_s14 }
  0x61   : > { %p1122_p8 = pnand %p1120_p6, %p1288_p7 }
  0x62   : > { %p1129_p12 = por %p1128_p11, %p1127_p10 }
  0x63   : > { %p1123_p9 = pneg %p1122_p8 }
  0x65   : > { %p1130_p13 = pnand %p1129_p12, %p1123_p9 }
  0x67   : > { %1133 = shalt.err (!%p1130_p13)
}
  0x68   : > { %s1194_s15 = smov [#allocation9]   ;;  %s1134_s16 = scalar_lea.vmem %s322_s11, 16 }
  0x69   : > { %988 = dma.vmem_to_smem (!%p1282_p5), %s300_s26, 16, %s1194_s15, [#allocation8]  }
  0x6a   : > { %p1135_p0 = scmp.ne.s32.totalorder %s322_s11, %s1134_s16  ;;  %p1142_p1 = scmp.lt.s32.totalorder %s322_s11, %s322_s11 }
  0x6b   : > { %p1143_p4 = scmp.lt.s32.totalorder %s1134_s16, %s1134_s16 }
  0x6c   : > { %p1137_p2 = pnand %p1135_p0, %p1288_p7 }
  0x6d   : > { %p1144_p6 = por %p1143_p4, %p1142_p1 }
  0x6e   : > { %p1138_p3 = pneg %p1137_p2 }
  0x70   : > { %p1145_p8 = pnand %p1144_p6, %p1138_p3 }
  0x72   : > { %1148 = shalt.err (!%p1145_p8)
}
  0x73   : > { %s1195_s17 = smov [#allocation12]   ;;  %p1680_p9 = scmp.ne.s32.totalorder %s1670_s13, 0 }
  0x74   : > { %994 = dma.vmem_to_smem (!%p1282_p5), %s322_s11, 16, %s1195_s17, [#allocation11]  }
  0x75   : > { %345 = sbr.rel (%p1680_p9) target bundleno = 231 (0xe7), region = 52 }
  0x7a   : > { %p1681_p10 = scmp.ne.s32.totalorder %s1669_s12, 0 }
  0x7c   : > { %1162 = dma.done.wait (%p1681_p10), [#allocation3], 16  }
  0x7d   : > { %1164 = vsyncadd (%p1681_p10), [#allocation3], 4294967280 }
  0x7e   : > { %1166 = dma.done.wait (%p1681_p10), [#allocation5], 80  }
  0x7f   : > { %1168 = vsyncadd (%p1681_p10), [#allocation5], 4294967216 }
  0x80   : > { %1170 = dma.done.wait (%p1681_p10), [#allocation8], 80  }
  0x81   : > { %1172 = vsyncadd (%p1681_p10), [#allocation8], 4294967216 }
  0x82   : > { %1174 = dma.done.wait (%p1681_p10), [#allocation11], 80  }
  0x83   : > { %1176 = vsyncadd (%p1681_p10), [#allocation11], 4294967216 }
  0x84   : > { %375 = sfence }
  0x85   : > { %p410_p5 = scmp.lt.s32.totalorder %s1179_s27, 1  ;;  %s433_s13 = sld [smem:[#allocation2]] }
  0x86   : > { %s880_s20 = sld [smem:[#allocation2 + $0x1]] }
  0x87   : > { %s1701_s27 = smov (!%p410_p5, %s1179_s27), 1  ;;  %s881_s22 = sld [smem:[#allocation2 + $0x2]] }
  0x88   : > { %1682 = sst [smem:[#allocation20_spill]] %s1701_s27  ;;  %s1650_s18 = sshll.u32 %s1701_s27, 3 }
  0x89   : > { %s882_s19 = sld [smem:[#allocation2 + $0x3]] }
  0x8a   : > { %s1683_s0 = sld [smem:[#allocation25_spill]] }
  0x8b   : > { %v434_v2 = vstv %s433_s13  ;;  %s1375_s12 = sld [smem:[#allocation4]] }
  0x8c   : > { %v437_v5 = vstv %s880_s20  ;;  %s1380_s25 = sld [smem:[#allocation4 + $0x1]] }
  0x8d   : > { %v441_v8 = vstv %s881_s22  ;;  %s1382_s26 = sld [smem:[#allocation4 + $0x2]] }
  0x8e   : > { %s1385_s30 = sld [smem:[#allocation4 + $0x3]] }
  0x8f   : > { %v445_v11 = vstv %s882_s19  ;;  %s1388_s10 = sld [smem:[#allocation6]] }
  0x90   : > { %s417_s24 = scalar_lea.vmem %s1683_s0, %s1650_s18  ;;  %s1390_s11 = sld [smem:[#allocation4 + $0x80]] }
  0x91   : > { %v1368_v0 = vld [vmem:[%s417_s24] sm:$0x3]  ;;  %v1370_v1 = vld [vmem:[%s417_s24 + $0x2] sm:$0x3]  ;;  %v1372_v3 = vld [vmem:[%s417_s24 + $0x4] sm:$0x3]  ;;  %v463_v18 = vstv %s1375_s12 }
  0x92   : > { %v435_v4 = vmul.f32 %v434_v2, %v1368_v0  ;;  %v1377_v6 = vld [vmem:[%s417_s24 + $0x6] sm:$0x3]  ;;  %v438_v7 = vmul.f32 %v1370_v1, %v437_v5  ;;  %v442_v10 = vmul.f32 %v1372_v3, %v441_v8  ;;  %s1392_s14 = sld [smem:[#allocation4 + $0x81]]  ;;  %v466_v19 = vstv %s1380_s25 }
  0x93   : > { %v446_v12 = vmul.f32 %v1377_v6, %v445_v11  ;;  %s1394_s15 = sld [smem:[#allocation4 + $0x82]]  ;;  %v470_v20 = vstv %s1382_s26 }
  0x94   : > { %v439_v9 = vadd.f32 %v438_v7, %v435_v4  ;;  %s1396_s16 = sld [smem:[#allocation4 + $0x83]]  ;;  %v474_v21 = vstv %s1385_s30 }
  0x95   : > { %s1398_s17 = sld [smem:[#allocation6 + $0x1]]  ;;  %v478_v22 = vstv %s1388_s10 }
  0x96   : > { %v443_v13 = vadd.f32 %v442_v10, %v439_v9  ;;  %s1400_s13 = sld [smem:[#allocation4 + $0x100]]  ;;  %v482_v23 = vstv %s1390_s11 }
  0x97   : > { %s1402_s20 = sld [smem:[#allocation4 + $0x101]] }
  0x98   : > { %v447_v14 = vadd.f32 %v446_v12, %v443_v13  ;;  %s1404_s22 = sld [smem:[#allocation4 + $0x102]]  ;;  %v485_v24 = vstv %s1392_s14 }
  0x99   : > { %s1406_s19 = sld [smem:[#allocation4 + $0x103]]  ;;  %v489_v25 = vstv %s1394_s15 }
  0x9a   : > { %v883_v15 = vmul.f32 -1.442695, %v447_v14  ;;  %s1408_s21 = sld [smem:[#allocation6 + $0x2]]  ;;  %v493_v26 = vstv %s1396_s16 }
  0x9b   : > { %s1410_s23 = sld [smem:[#allocation4 + $0x180]]  ;;  %v497_v27 = vstv %s1398_s17 }
  0x9c   : > { %1040 = vpow2.f32 %v883_v15  ;;  %s1412_s24 = sld [smem:[#allocation4 + $0x181]]  ;;  %v501_v28 = vstv %s1400_s13 }
  0x9d   : > { %s1414_s18 = sld [smem:[#allocation4 + $0x182]]  ;;  %v504_v29 = vstv %s1402_s20 }
  0x9e   : > { %s1416_s0 = sld [smem:[#allocation4 + $0x183]]  ;;  %v508_v30 = vstv %s1404_s22 }
  0x9f   : > { %s1418_s1 = sld [smem:[#allocation6 + $0x3]]  ;;  %v512_v31 = vstv %s1406_s19 }
  0xa0   : > { %s1420_s2 = sld [smem:[#allocation7]]  ;;  %v516_v32 = vstv %s1408_s21 }
  0xa1   : > { %s1422_s3 = sld [smem:[#allocation7 + $0x1]]  ;;  %v520_v33 = vstv %s1410_s23 }
  0xa2   : > { %s1424_s4 = sld [smem:[#allocation7 + $0x2]]  ;;  %v523_v34 = vstv %s1412_s24 }
  0xa3   : > { %s1426_s5 = sld [smem:[#allocation7 + $0x3]]  ;;  %v527_v35 = vstv %s1414_s18 }
  0xa4   : > { %s1428_s6 = sld [smem:[#allocation9]]  ;;  %v531_v36 = vstv %s1416_s0 }
  0xa5   : > { %s1430_s7 = sld [smem:[#allocation7 + $0x80]]  ;;  %v535_v37 = vstv %s1418_s1 }
  0xa6   : > { %s1432_s9 = sld [smem:[#allocation7 + $0x81]]  ;;  %v539_v38 = vstv %s1420_s2 }
  0xa7   : > { %s1434_s28 = sld [smem:[#allocation7 + $0x82]]  ;;  %v542_v39 = vstv %s1422_s3 }
  0xa8   : > { %s1436_s29 = sld [smem:[#allocation7 + $0x83]]  ;;  %v546_v40 = vstv %s1424_s4 }
  0xa9   : > { %v1041_v16 = vpop.eup %1040  ;;  %s1438_s8 = sld [smem:[#allocation9 + $0x1]]  ;;  %v550_v41 = vstv %s1426_s5 }
  0xaa   : > { %1684 = sst [smem:[#allocation21_spill]] %s1428_s6  ;;  %v451_v17 = vadd.f32 1.0, %v1041_v16 }
  0xab   : > { %1685 = sst [smem:[#allocation22_spill]] %s1430_s7 }
  0xac   : > { %1042 = vrcp.f32 %v451_v17  ;;  %s1440_s27 = sld [smem:[#allocation7 + $0x100]]  ;;  %v561_v44 = vstv %s1432_s9 }
  0xad   : > { %s1442_s6 = sld [smem:[#allocation7 + $0x101]]  ;;  %v565_v45 = vstv %s1434_s28 }
  0xae   : > { %1686 = sst [smem:[#allocation23_spill]] %s1436_s29 }
  0xaf   : > { %s1444_s7 = sld [smem:[#allocation7 + $0x102]]  ;;  %v573_v48 = vstv %s1438_s8 }
  0xb0   : > { %s1450_s29 = sld [smem:[#allocation7 + $0x103]] }
  0xb1   : > { %s1688_s12 = sld [smem:[#allocation21_spill]] }
  0xb2   : > { %s1689_s25 = sld [smem:[#allocation22_spill]]  ;;  %v577_v49 = vstv %s1440_s27 }
  0xb3   : > { %s1462_s26 = sld [smem:[#allocation7 + $0x180]]  ;;  %v580_v50 = vstv %s1442_s6 }
  0xb4   : > { %s1690_s30 = sld [smem:[#allocation23_spill]] }
  0xb5   : > { %1687 = sst [smem:[#allocation24_spill]] %s1444_s7 }
  0xb6   : > { %s1456_s7 = sld [smem:[#allocation9 + $0x2]]  ;;  %v588_v56 = vstv %s1450_s29 }
  0xb7   : > { %s1691_s11 = sld [smem:[#allocation24_spill]]  ;;  %v554_v42 = vstv %s1688_s12 }
  0xb8   : > { %v558_v43 = vstv %s1689_s25  ;;  %s1504_s0 = sld [smem:[#allocation7 + $0x181]] }
  0xb9   : > { %v1043_v46 = vpop.eup %1042  ;;  %v596_v58 = vstv %s1462_s26  ;;  %s1506_s2 = sld [smem:[#allocation7 + $0x182]] }
  0xba   : > { %v569_v47 = vstv %s1690_s30  ;;  %v454_v51 = vmul.f32 %v1043_v46, %v1368_v0  ;;  %v455_v52 = vmul.f32 %v1043_v46, %v1370_v1  ;;  %v456_v53 = vmul.f32 %v1043_v46, %v1372_v3  ;;  %s1508_s3 = sld [smem:[#allocation7 + $0x183]] }
  0xbb   : > { %v457_v54 = vmul.f32 %v1043_v46, %v1377_v6  ;;  %s1510_s4 = sld [smem:[#allocation9 + $0x3]] }
  0xbc   : > { %v592_v57 = vstv %s1456_s7  ;;  %v1493_v59 = vsub.f32 %v1368_v0, %v454_v51  ;;  %v1496_v60 = vsub.f32 %v1370_v1, %v455_v52  ;;  %v1499_v61 = vsub.f32 %v1372_v3, %v456_v53  ;;  %s1512_s5 = sld [smem:[#allocation10]] }
  0xbd   : > { %v584_v55 = vstv %s1691_s11  ;;  %v1502_v62 = vsub.f32 %v1377_v6, %v457_v54  ;;  %v464_v63 = vmul.f32 %v463_v18, %v454_v51  ;;  %v467_v2 = vmul.f32 %v466_v19, %v455_v52  ;;  %s1514_s28 = sld [smem:[#allocation10 + $0x1]] }
  0xbe   : > { %v471_v4 = vmul.f32 %v470_v20, %v456_v53  ;;  %v475_v5 = vmul.f32 %v474_v21, %v457_v54  ;;  %v483_v7 = vmul.f32 %v482_v23, %v454_v51  ;;  %v486_v0 = vmul.f32 %v485_v24, %v455_v52  ;;  %s1518_s9 = sld [smem:[#allocation10 + $0x2]] }
  0xbf   : > { %v490_v8 = vmul.f32 %v489_v25, %v456_v53  ;;  %v494_v9 = vmul.f32 %v493_v26, %v457_v54  ;;  %v468_v1 = vadd.f32 %v467_v2, %v464_v63  ;;  %v502_v3 = vmul.f32 %v501_v28, %v454_v51  ;;  %s1522_s18 = sld [smem:[#allocation10 + $0x3]] }
  0xc0   : > { %v505_v10 = vmul.f32 %v504_v29, %v455_v52  ;;  %v509_v11 = vmul.f32 %v508_v30, %v456_v53  ;;  %v487_v6 = vadd.f32 %v486_v0, %v483_v7  ;;  %v513_v12 = vmul.f32 %v512_v31, %v457_v54  ;;  %s1525_s14 = sld [smem:[#allocation12]] }
  0xc1   : > { %v521_v13 = vmul.f32 %v520_v33, %v454_v51  ;;  %v524_v14 = vmul.f32 %v523_v34, %v455_v52  ;;  %v472_v15 = vadd.f32 %v471_v4, %v468_v1  ;;  %v528_v17 = vmul.f32 %v527_v35, %v456_v53  ;;  %s1531_s15 = sld [smem:[#allocation10 + $0x80]] }
  0xc2   : > { %v506_v16 = vadd.f32 %v505_v10, %v502_v3  ;;  %v532_v18 = vmul.f32 %v531_v36, %v457_v54  ;;  %v491_v19 = vadd.f32 %v490_v8, %v487_v6  ;;  %v540_v21 = vmul.f32 %v539_v38, %v1493_v59  ;;  %s1536_s16 = sld [smem:[#allocation10 + $0x81]] }
  0xc3   : > { %v525_v20 = vadd.f32 %v524_v14, %v521_v13  ;;  %v543_v23 = vmul.f32 %v542_v39, %v1496_v60  ;;  %v476_v24 = vadd.f32 %v475_v5, %v472_v15  ;;  %v547_v26 = vmul.f32 %v546_v40, %v1499_v61  ;;  %s1548_s10 = sld [smem:[#allocation10 + $0x82]] }
  0xc4   : > { %v510_v25 = vadd.f32 %v509_v11, %v506_v16  ;;  %v551_v28 = vmul.f32 %v550_v41, %v1502_v62  ;;  %v495_v29 = vadd.f32 %v494_v9, %v491_v19  ;;  %v559_v33 = vmul.f32 %v558_v43, %v1493_v59  ;;  %s1557_s17 = sld [smem:[#allocation10 + $0x83]] }
  0xc5   : > { %v529_v30 = vadd.f32 %v528_v17, %v525_v20  ;;  %v544_v31 = vadd.f32 %v543_v23, %v540_v21  ;;  %v479_v34 = vadd.f32 %v478_v22, %v476_v24  ;;  %v562_v36 = vmul.f32 %v561_v44, %v1496_v60  ;;  %s1563_s27 = sld [smem:[#allocation12 + $0x1]] }
  0xc6   : > { %v514_v35 = vadd.f32 %v513_v12, %v510_v25  ;;  %v566_v38 = vmul.f32 %v565_v45, %v1499_v61  ;;  %v498_v39 = vadd.f32 %v497_v27, %v495_v29  ;;  %v599_v46 = vstv %s1504_s0  ;;  %s1573_s1 = sld [smem:[#allocation10 + $0x100]] }
  0xc7   : > { %v533_v40 = vadd.f32 %v532_v18, %v529_v30  ;;  %v548_v41 = vadd.f32 %v547_v26, %v544_v31  ;;  %v563_v43 = vadd.f32 %v562_v36, %v559_v33  ;;  %v570_v44 = vmul.f32 %v569_v47, %v1502_v62  ;;  %s1578_s6 = sld [smem:[#allocation10 + $0x101]] }
  0xc8   : > { %v1540_v22 = vadd.f32 %v516_v32, %v514_v35  ;;  %v578_v45 = vmul.f32 %v577_v49, %v1493_v59  ;;  %v480_v27 = vmax.f32 %v479_v34, 0.0  ;;  %v581_v32 = vmul.f32 %v580_v50, %v1496_v60  ;;  %s1582_s29 = sld [smem:[#allocation10 + $0x102]] }
  0xc9   : > { %v1552_v51 = vadd.f32 %v535_v37, %v533_v40  ;;  %v552_v52 = vadd.f32 %v551_v28, %v548_v41  ;;  %v499_v53 = vmax.f32 %v498_v39, 0.0  ;;  %v567_v54 = vadd.f32 %v566_v38, %v563_v43  ;;  %s1588_s13 = sld [smem:[#allocation10 + $0x103]] }
  0xca   : > { %v518_v47 = vmax.f32 %v1540_v22, 0.0  ;;  %v585_v49 = vmul.f32 %v584_v55, %v1499_v61  ;;  %v582_v63 = vadd.f32 %v581_v32, %v578_v45  ;;  %v589_v2 = vmul.f32 %v588_v56, %v1502_v62  ;;  %s1592_s20 = sld [smem:[#allocation10 + $0x180]] }
  0xcb   : > { %v555_v37 = vadd.f32 %v554_v42, %v552_v52  ;;  %v597_v50 = vmul.f32 %v596_v58, %v1493_v59  ;;  %v571_v4 = vadd.f32 %v570_v44, %v567_v54  ;;  %v600_v5 = vmul.f32 %v599_v46, %v1496_v60  ;;  %s1596_s8 = sld [smem:[#allocation10 + $0x181]] }
  0xcc   : > { %v603_v55 = vstv %s1506_s2  ;;  %v607_v7 = vstv %s1508_s3  ;;  %v537_v42 = vmax.f32 %v1552_v51, 0.0  ;;  %v586_v56 = vadd.f32 %v585_v49, %v582_v63  ;;  %s1603_s22 = sld [smem:[#allocation12 + $0x2]] }
  0xcd   : > { %v556_v0 = vmax.f32 %v555_v37, 0.0  ;;  %v604_v8 = vmul.f32 %v603_v55, %v1499_v61  ;;  %v574_v58 = vadd.f32 %v573_v48, %v571_v4  ;;  %v601_v59 = vadd.f32 %v600_v5, %v597_v50  ;;  %s1605_s19 = sld [smem:[#allocation10 + $0x182]] }
  0xce   : > { %v608_v60 = vmul.f32 %v607_v7, %v1502_v62  ;;  %v611_v9 = vstv %s1510_s4  ;;  %v590_v1 = vadd.f32 %v589_v2, %v586_v56  ;;  %v619_v10 = vstv %s1512_s5  ;;  %s1610_s7 = sld [smem:[#allocation10 + $0x183]] }
  0xcf   : > { %v614_v3 = vadd.f32 %v556_v0, %v480_v27  ;;  %v622_v11 = vstv %s1514_s28  ;;  %v575_v61 = vmax.f32 %v574_v58, 0.0  ;;  %v605_v6 = vadd.f32 %v604_v8, %v601_v59  ;;  %s1616_s21 = sld [smem:[#allocation12 + $0x3]] }
  0xd0   : > { %v626_v48 = vstv %s1518_s9  ;;  %v630_v12 = vstv %s1522_s18  ;;  %v593_v62 = vadd.f32 %v592_v57, %v590_v1  ;;  %v634_v13 = vstv %s1525_s14  ;;  %s1692_s23 = sld [smem:[#allocation20_spill]] }
  0xd1   : > { %v638_v14 = vstv %s1531_s15  ;;  %v641_v15 = vstv %s1536_s16  ;;  %v609_v16 = vadd.f32 %v608_v60, %v605_v6  ;;  %v615_v17 = vadd.f32 %v575_v61, %v499_v53  ;;  %s1694_s26 = sld [smem:[#allocation33_spill]] }
  0xd2   : > { %v620_v18 = vmul.f32 %v619_v10, %v614_v3  ;;  %v639_v19 = vmul.f32 %v638_v14, %v614_v3  ;;  %v594_v20 = vmax.f32 %v593_v62, 0.0  ;;  %v645_v21 = vstv %s1548_s10 }
  0xd3   : > { %v649_v23 = vstv %s1557_s17  ;;  %v657_v24 = vstv %s1573_s1  ;;  %v612_v57 = vadd.f32 %v611_v9, %v609_v16  ;;  %v623_v25 = vmul.f32 %v622_v11, %v615_v17 }
  0xd4   : > { %v642_v26 = vmul.f32 %v641_v15, %v615_v17  ;;  %v658_v28 = vmul.f32 %v657_v24, %v614_v3  ;;  %v616_v29 = vadd.f32 %v594_v20, %v518_v47  ;;  %v653_v30 = vstv %s1563_s27 }
  0xd5   : > { %v660_v31 = vstv %s1578_s6  ;;  %v664_v33 = vstv %s1582_s29  ;;  %v613_v34 = vmax.f32 %v612_v57, 0.0  ;;  %v624_v35 = vadd.f32 %v623_v25, %v620_v18 }
  0xd6   : > { %v643_v36 = vadd.f32 %v642_v26, %v639_v19  ;;  %v661_v38 = vmul.f32 %v660_v31, %v615_v17  ;;  %v627_v39 = vmul.f32 %v626_v48, %v616_v29  ;;  %v646_v40 = vmul.f32 %v645_v21, %v616_v29  ;;  %s1693_s24 = sshll.u32 %s1692_s23, 3 }
  0xd7   : > { %v665_v41 = vmul.f32 %v664_v33, %v616_v29  ;;  %v668_v46 = vstv %s1588_s13  ;;  %v617_v22 = vadd.f32 %v613_v34, %v537_v42  ;;  %v676_v44 = vstv %s1592_s20  ;;  %s425_s30 = scalar_lea.vmem %s1694_s26, %s1693_s24 }
  0xd8   : > { %v662_v43 = vadd.f32 %v661_v38, %v658_v28  ;;  %v679_v45 = vstv %s1596_s8  ;;  %v628_v27 = vadd.f32 %v627_v39, %v624_v35  ;;  %v647_v51 = vadd.f32 %v646_v40, %v643_v36 }
  0xd9   : > { %v677_v52 = vmul.f32 %v676_v44, %v614_v3  ;;  %v680_v32 = vmul.f32 %v679_v45, %v615_v17  ;;  %v631_v53 = vmul.f32 %v630_v12, %v617_v22  ;;  %v650_v47 = vmul.f32 %v649_v23, %v617_v22 }
  0xda   : > { %v666_v54 = vadd.f32 %v665_v41, %v662_v43  ;;  %v669_v49 = vmul.f32 %v668_v46, %v617_v22  ;;  %v672_v37 = vstv %s1603_s22  ;;  %v683_v2 = vstv %s1605_s19 }
  0xdb   : > { %v681_v63 = vadd.f32 %v680_v32, %v677_v52  ;;  %v687_v50 = vstv %s1610_s7  ;;  %v632_v4 = vadd.f32 %v631_v53, %v628_v27  ;;  %v651_v5 = vadd.f32 %v650_v47, %v647_v51 }
  0xdc   : > { %v670_v55 = vadd.f32 %v669_v49, %v666_v54  ;;  %v684_v7 = vmul.f32 %v683_v2, %v616_v29  ;;  %v688_v42 = vmul.f32 %v687_v50, %v617_v22  ;;  %v691_v59 = vstv %s1616_s21 }
  0xdd   : > { %v635_v0 = vadd.f32 %v634_v13, %v632_v4  ;;  %v654_v56 = vadd.f32 %v653_v30, %v651_v5 }
  0xde   : > { %v673_v8 = vadd.f32 %v672_v37, %v670_v55  ;;  %v685_v58 = vadd.f32 %v684_v7, %v681_v63 }
  0xdf   : > { %v636_v60 = vmax.f32 %v635_v0, 0.0  ;;  %v655_v9 = vmax.f32 %v654_v56, 0.0 }
  0xe0   : > { %v674_v1 = vmax.f32 %v673_v8, 0.0  ;;  %v689_v3 = vadd.f32 %v688_v42, %v685_v58 }
  0xe1   : > { %694 = vst [vmem:[%s425_s30] sm:$0x3] %v636_v60  ;;  %938 = vst [vmem:[%s425_s30 + $0x2] sm:$0x3] %v655_v9 }
  0xe2   : > { %v692_v10 = vadd.f32 %v691_v59, %v689_v3  ;;  %939 = vst [vmem:[%s425_s30 + $0x4] sm:$0x3] %v674_v1 }
  0xe4   : > { %v693_v11 = vmax.f32 %v692_v10, 0.0 }
  0xe6   : > { %940 = vst [vmem:[%s425_s30 + $0x6] sm:$0x3] %v693_v11 }
  0xe7 PF: > { %s1695_s11 = sld [smem:[#allocation18_spill]] }
  0xe8   : > { %s1696_s27 = sld [smem:[#allocation17_spill]] }
  0xe9   : > { %s1697_s28 = sld [smem:[#allocation19_spill]] }
  0xed   : > { %s22_s29 = sadd.s32 1, %s1695_s11  }
  0xee   : > { %p19_p7 = scmp.ge.s32.totalorder %s22_s29, 4  }
  0xf0   :  { %21 = sbr.rel (!%p19_p7) target bundleno = 15 (0xf), region = 117 }
  0xf5   :  { %728 = vsyncpa [#allocation3], 1 }
  0xf6   :  { %730 = vsyncpa [#allocation3 + $0x1], 1 }
  0xf7   :  { %731 = vsyncpa [#allocation5], 1 }
  0xf8   :  { %732 = vsyncpa [#allocation8], 1 }
  0xf9   :  { %733 = vsyncpa [#allocation11], 1 }

</bundles_post_ra>
